<compile_context>
chip_gen: v7x
topology: tpu7x:2x2x1
jax: 0.10.0
libtpu: 0.0.40
codegen_flags: <defaults>
</compile_context>

<pallas_src>
import functools

import jax
import jax.numpy as jnp
from jax.experimental import pallas as pl
from jax.experimental.pallas import tpu as pltpu


def _lsce_kernel(preds_ref, tgt_ref, out_ref, loss_acc, nll_acc,
                 *, eps, n_classes, batch, masked):
    c = pl.program_id(0)          # partial (core) index     -- "parallel"
    i = pl.program_id(1)          # batch-tile index          -- "arbitrary" (reduction)
    n_i = pl.num_programs(1)

    @pl.when(i == 0)
    def _():
        loss_acc[...] = jnp.zeros_like(loss_acc)
        nll_acc[...] = jnp.zeros_like(nll_acc)

    x = preds_ref[...].astype(jnp.float32)                      # (tb, C)
    tb = x.shape[0]

    if masked:
        # global (unclamped) tile index -> row ids; rows >= batch are padding/duplicates
        tile = c * n_i + i
        row_ids = tile * tb + jax.lax.broadcasted_iota(jnp.int32, (tb, 1), 0)
        valid = row_ids < batch                                  # (tb, 1) bool
        x = jnp.where(valid, x, 0.0)                             # keep garbage rows finite

    # per-row logsumexp (numerically stable), no full-tile logp materialization
    m = jnp.max(x, axis=-1, keepdims=True)                       # (tb, 1)
    lse = jnp.log(jnp.sum(jnp.exp(x - m), axis=-1, keepdims=True))
    s = m + lse                                                  # (tb, 1) logsumexp per row
    rowsum = jnp.sum(x, axis=-1, keepdims=True)                  # (tb, 1)

    # gather x[i, t_i] via a lane compare + select (no one-hot multiply)
    tgt = tgt_ref[...]                                           # (tb, 1) int32
    col = jax.lax.broadcasted_iota(jnp.int32, x.shape, 1)        # (tb, C)
    picked = jnp.sum(jnp.where(col == tgt, x, 0.0), axis=-1, keepdims=True)

    loss_rows = jnp.float32(n_classes) * s - rowsum              # -sum_c logp[i, c]
    nll_rows = s - picked                                        # -logp[i, t_i]

    if masked:
        mf = valid.astype(jnp.float32)
        loss_rows = loss_rows * mf
        nll_rows = nll_rows * mf

    loss_acc[...] += jnp.sum(loss_rows, axis=(0, 1), keepdims=True)
    nll_acc[...] += jnp.sum(nll_rows, axis=(0, 1), keepdims=True)

    @pl.when(i == n_i - 1)
    def _():
        loss_coef = eps / (n_classes * batch)        # eps * (loss_mean / C), folded
        nll_coef = (1.0 - eps) / batch               # (1 - eps) * nll_mean, folded
        val = loss_coef * loss_acc[...] + nll_coef * nll_acc[...]   # (1, 1)
        out_ref[...] = jnp.broadcast_to(val, out_ref.shape)          # lane-dense (8,128) block


def _round_up(x, m):
    return ((x + m - 1) // m) * m


def label_smooth_cross_entropy(preds, targets, eps, *, tb=None, num_partials=None):
    """preds: (B, C) float (f32/bf16), targets: (B,) int. Returns scalar float32."""
    B, C = preds.shape
    itemsize = jnp.dtype(preds.dtype).itemsize

    if tb is None:
        # ~4 MiB of logits per pipeline buffer, capped at 1024 rows, multiple of 8.
        target_bytes = 4 * 1024 * 1024
        cand = target_bytes // max(1, C * itemsize)
        cand = min(cand, 1024, _round_up(B, 8))
        tb = max(8, (cand // 8) * 8)

    n_real = -(-B // tb)                                  # number of real batch tiles
    if num_partials is None:
        num_partials = 2 if n_real >= 2 else 1            # feeds both TCs on v7x; harmless on 1-TC chips
    tiles_per_partial = -(-n_real // num_partials)
    grid_tiles = num_partials * tiles_per_partial
    needs_mask = (B % tb != 0) or (grid_tiles != n_real)

    targets2d = targets.astype(jnp.int32).reshape(B, 1)

    def tile_index(c, i):
        t = c * tiles_per_partial + i
        if grid_tiles != n_real:                          # clamp duplicate tiles (fully masked in-kernel)
            t = jnp.minimum(t, n_real - 1)
        return t

    kern = functools.partial(_lsce_kernel, eps=float(eps), n_classes=C, batch=B,
                             masked=needs_mask)

    out = pl.pallas_call(
        kern,
        # one lane-dense (8,128) slab per partial; scalar lives at [8*c, 0]
        out_shape=jax.ShapeDtypeStruct((num_partials * 8, 128), jnp.float32),
        grid_spec=pltpu.PrefetchScalarGridSpec(
            num_scalar_prefetch=0,
            grid=(num_partials, tiles_per_partial),
            in_specs=[
                pl.BlockSpec((tb, C), lambda c, i: (tile_index(c, i), 0)),   # logits tile
                pl.BlockSpec((tb, 1), lambda c, i: (tile_index(c, i), 0)),   # target ids tile
            ],
            out_specs=pl.BlockSpec((8, 128), lambda c, i: (c, 0)),
            scratch_shapes=[
                pltpu.VMEM((1, 1), jnp.float32),          # smoothing-term accumulator
                pltpu.VMEM((1, 1), jnp.float32),          # nll accumulator
            ],
        ),
        compiler_params=pltpu.CompilerParams(
            dimension_semantics=("parallel", "arbitrary"),
            vmem_limit_bytes=32 * 1024 * 1024,            # explicit: safe on v5e/v6e/v7x
        ),
    )(preds, targets2d)

    return jnp.sum(out[::8, 0])


def _reference(preds, targets, eps):
    logp = jax.nn.log_softmax(preds.astype(jnp.float32), axis=-1)
    n = preds.shape[-1]
    loss = -jnp.mean(jnp.sum(logp, axis=-1))
    nll = -jnp.mean(logp[jnp.arange(preds.shape[0]), targets])
    return eps * (loss / n) + (1.0 - eps) * nll


if __name__ == "__main__":
    key = jax.random.PRNGKey(0)
    eps = 0.1

    # --- main small-shape demo (single tile, auto config) ---
    k1, k2, k3, k4, k5, k6 = jax.random.split(key, 6)
    B, C = 16, 32
    preds = jax.random.normal(k1, (B, C), dtype=jnp.float32)
    targets = jax.random.randint(k2, (B,), 0, C, dtype=jnp.int32)
    out = jax.block_until_ready(label_smooth_cross_entropy(preds, targets, eps))
    ref = _reference(preds, targets, eps)
    assert jnp.allclose(out, ref, rtol=1e-5, atol=1e-5), (out, ref)

    # --- multi-tile + two partials, exact division (exercises accumulation path) ---
    B2, C2 = 48, 64
    preds2 = jax.random.normal(k3, (B2, C2), dtype=jnp.float32)
    targets2 = jax.random.randint(k4, (B2,), 0, C2, dtype=jnp.int32)
    out2 = jax.block_until_ready(label_smooth_cross_entropy(preds2, targets2, eps, tb=8))
    ref2 = _reference(preds2, targets2, eps)
    assert jnp.allclose(out2, ref2, rtol=1e-5, atol=1e-5), (out2, ref2)

    # --- ragged batch + clamped duplicate tile + bf16 input (exercises masking path) ---
    B3, C3 = 36, 128
    preds3 = jax.random.normal(k5, (B3, C3), dtype=jnp.float32).astype(jnp.bfloat16)
    targets3 = jax.random.randint(k6, (B3,), 0, C3, dtype=jnp.int32)
    out3 = jax.block_until_ready(label_smooth_cross_entropy(preds3, targets3, eps, tb=8))
    ref3 = _reference(preds3, targets3, eps)
    assert jnp.allclose(out3, ref3, rtol=1e-4, atol=1e-4), (out3, ref3)

    print("KERNEL_OK")
</pallas_src>

<mosaic_0001>
module attributes {stable_mosaic.version = 11 : i64} {
  func.func @_lsce_kernel(%arg0: i32, %arg1: i32, %arg2: memref<16x32xf32, #tpu.memory_space<vmem>>, %arg3: memref<16x1xi32, #tpu.memory_space<vmem>>, %arg4: memref<8x128xf32, #tpu.memory_space<vmem>>, %arg5: memref<1x1xf32, #tpu.memory_space<vmem>>, %arg6: memref<1x1xf32, #tpu.memory_space<vmem>>) attributes {dimension_semantics = [#tpu.dimension_semantics<parallel>, #tpu.dimension_semantics<arbitrary>], iteration_bounds = array<i64: 1, 1>, scalar_prefetch = 0 : i64, scratch_operands = 2 : i64, tpu.core_type = #tpu.core_type<tc>, window_params = [{transform_indices = @transform_0, window_bounds = array<i64: 16, 32>}, {transform_indices = @transform_1, window_bounds = array<i64: 16, 1>}, {transform_indices = @transform_2, window_bounds = array<i64: 8, 128>}]} {
    %c0_i32 = arith.constant 0 : i32
    %0 = arith.cmpi eq, %arg1, %c0_i32 : i32
    %1 = arith.extui %0 : i1 to i32
    %c0_i32_0 = arith.constant 0 : i32
    %2 = arith.cmpi ne, %1, %c0_i32_0 : i32
    scf.if %2 {
      %cst_21 = arith.constant 0.000000e+00 : f32
      %46 = vector.broadcast %cst_21 : f32 to vector<1x1xf32>
      %c0_22 = arith.constant 0 : index
      %c0_23 = arith.constant 0 : index
      %47 = vector.load %arg5[%c0_22, %c0_23] : memref<1x1xf32, #tpu.memory_space<vmem>>, vector<1x1xf32>
      tpu.vector_store %arg5[%c0_22, %c0_23], %46 {strides = array<i32>} : memref<1x1xf32, #tpu.memory_space<vmem>>, vector<1x1xf32>,
      %cst_24 = arith.constant 0.000000e+00 : f32
      %48 = vector.broadcast %cst_24 : f32 to vector<1x1xf32>
      %c0_25 = arith.constant 0 : index
      %c0_26 = arith.constant 0 : index
      %49 = vector.load %arg6[%c0_25, %c0_26] : memref<1x1xf32, #tpu.memory_space<vmem>>, vector<1x1xf32>
      tpu.vector_store %arg6[%c0_25, %c0_26], %48 {strides = array<i32>} : memref<1x1xf32, #tpu.memory_space<vmem>>, vector<1x1xf32>,
    } else {
    }
    %c0 = arith.constant 0 : index
    %c0_1 = arith.constant 0 : index
    %3 = vector.load %arg2[%c0, %c0_1] : memref<16x32xf32, #tpu.memory_space<vmem>>, vector<16x32xf32>
    %cst = arith.constant dense<0xFF800000> : vector<16xf32>
    %4 = vector.multi_reduction <maximumf>, %3, %cst [1] : vector<16x32xf32> to vector<16xf32>
    %5 = vector.shape_cast %4 : vector<16xf32> to vector<16x1xf32>
    %6 = vector.broadcast %5 : vector<16x1xf32> to vector<16x32xf32>
    %7 = arith.subf %3, %6 : vector<16x32xf32>
    %8 = math.exp %7 : vector<16x32xf32>
    %cst_2 = arith.constant dense<0.000000e+00> : vector<16xf32>
    %9 = vector.multi_reduction <add>, %8, %cst_2 [1] : vector<16x32xf32> to vector<16xf32>
    %10 = vector.shape_cast %9 : vector<16xf32> to vector<16x1xf32>
    %11 = math.log %10 : vector<16x1xf32>
    %12 = arith.addf %5, %11 : vector<16x1xf32>
    %cst_3 = arith.constant dense<0.000000e+00> : vector<16xf32>
    %13 = vector.multi_reduction <add>, %3, %cst_3 [1] : vector<16x32xf32> to vector<16xf32>
    %14 = vector.shape_cast %13 : vector<16xf32> to vector<16x1xf32>
    %c0_4 = arith.constant 0 : index
    %c0_5 = arith.constant 0 : index
    %15 = vector.load %arg3[%c0_4, %c0_5] : memref<16x1xi32, #tpu.memory_space<vmem>>, vector<16x1xi32>
    %16 = tpu.iota {dimensions = array<i32: 1>} : vector<16x32xi32>
    %17 = vector.broadcast %15 : vector<16x1xi32> to vector<16x32xi32>
    %18 = arith.cmpi eq, %16, %17 : vector<16x32xi32>
    %cst_6 = arith.constant 0.000000e+00 : f32
    %19 = vector.broadcast %cst_6 : f32 to vector<16x32xf32>
    %20 = arith.select %18, %3, %19 : vector<16x32xi1>, vector<16x32xf32>
    %cst_7 = arith.constant dense<0.000000e+00> : vector<16xf32>
    %21 = vector.multi_reduction <add>, %20, %cst_7 [1] : vector<16x32xf32> to vector<16xf32>
    %22 = vector.shape_cast %21 : vector<16xf32> to vector<16x1xf32>
    %cst_8 = arith.constant 3.200000e+01 : f32
    %23 = vector.broadcast %cst_8 : f32 to vector<16x1xf32>
    %24 = arith.mulf %23, %12 : vector<16x1xf32>
    %25 = arith.subf %24, %14 : vector<16x1xf32>
    %26 = arith.subf %12, %22 : vector<16x1xf32>
    %c0_9 = arith.constant 0 : index
    %c0_10 = arith.constant 0 : index
    %27 = vector.load %arg5[%c0_9, %c0_10] : memref<1x1xf32, #tpu.memory_space<vmem>>, vector<1x1xf32>
    %28 = vector.shape_cast %25 : vector<16x1xf32> to vector<1x16x1xf32>
    %cst_11 = arith.constant dense<0.000000e+00> : vector<1xf32>
    %29 = vector.multi_reduction <add>, %28, %cst_11 [1, 2] : vector<1x16x1xf32> to vector<1xf32>
    %30 = vector.shape_cast %29 : vector<1xf32> to vector<1x1x1xf32>
    %31 = vector.extract %30[0, 0, 0] : f32 from vector<1x1x1xf32>
    %32 = vector.broadcast %31 : f32 to vector<1x1xf32>
    %33 = arith.addf %27, %32 : vector<1x1xf32>
    %c0_12 = arith.constant 0 : index
    %c0_13 = arith.constant 0 : index
    %34 = vector.load %arg5[%c0_12, %c0_13] : memref<1x1xf32, #tpu.memory_space<vmem>>, vector<1x1xf32>
    tpu.vector_store %arg5[%c0_12, %c0_13], %33 {strides = array<i32>} : memref<1x1xf32, #tpu.memory_space<vmem>>, vector<1x1xf32>,
    %c0_14 = arith.constant 0 : index
    %c0_15 = arith.constant 0 : index
    %35 = vector.load %arg6[%c0_14, %c0_15] : memref<1x1xf32, #tpu.memory_space<vmem>>, vector<1x1xf32>
    %36 = vector.shape_cast %26 : vector<16x1xf32> to vector<1x16x1xf32>
    %cst_16 = arith.constant dense<0.000000e+00> : vector<1xf32>
    %37 = vector.multi_reduction <add>, %36, %cst_16 [1, 2] : vector<1x16x1xf32> to vector<1xf32>
    %38 = vector.shape_cast %37 : vector<1xf32> to vector<1x1x1xf32>
    %39 = vector.extract %38[0, 0, 0] : f32 from vector<1x1x1xf32>
    %40 = vector.broadcast %39 : f32 to vector<1x1xf32>
    %41 = arith.addf %35, %40 : vector<1x1xf32>
    %c0_17 = arith.constant 0 : index
    %c0_18 = arith.constant 0 : index
    %42 = vector.load %arg6[%c0_17, %c0_18] : memref<1x1xf32, #tpu.memory_space<vmem>>, vector<1x1xf32>
    tpu.vector_store %arg6[%c0_17, %c0_18], %41 {strides = array<i32>} : memref<1x1xf32, #tpu.memory_space<vmem>>, vector<1x1xf32>,
    %c0_i32_19 = arith.constant 0 : i32
    %43 = arith.cmpi eq, %arg1, %c0_i32_19 : i32
    %44 = arith.extui %43 : i1 to i32
    %c0_i32_20 = arith.constant 0 : i32
    %45 = arith.cmpi ne, %44, %c0_i32_20 : i32
    scf.if %45 {
      %c0_21 = arith.constant 0 : index
      %c0_22 = arith.constant 0 : index
      %46 = vector.load %arg5[%c0_21, %c0_22] : memref<1x1xf32, #tpu.memory_space<vmem>>, vector<1x1xf32>
      %cst_23 = arith.constant 1.95312503E-4 : f32
      %47 = vector.broadcast %cst_23 : f32 to vector<1x1xf32>
      %48 = arith.mulf %47, %46 : vector<1x1xf32>
      %c0_24 = arith.constant 0 : index
      %c0_25 = arith.constant 0 : index
      %49 = vector.load %arg6[%c0_24, %c0_25] : memref<1x1xf32, #tpu.memory_space<vmem>>, vector<1x1xf32>
      %cst_26 = arith.constant 5.625000e-02 : f32
      %50 = vector.broadcast %cst_26 : f32 to vector<1x1xf32>
      %51 = arith.mulf %50, %49 : vector<1x1xf32>
      %52 = arith.addf %48, %51 : vector<1x1xf32>
      %53 = vector.shape_cast %52 : vector<1x1xf32> to vector<1x1xf32>
      %54 = vector.broadcast %53 : vector<1x1xf32> to vector<8x128xf32>
      %c0_27 = arith.constant 0 : index
      %c0_28 = arith.constant 0 : index
      %55 = vector.load %arg4[%c0_27, %c0_28] : memref<8x128xf32, #tpu.memory_space<vmem>>, vector<8x128xf32>
      tpu.vector_store %arg4[%c0_27, %c0_28], %54 {strides = array<i32>} : memref<8x128xf32, #tpu.memory_space<vmem>>, vector<8x128xf32>,
    } else {
    }
    return
  }
  func.func @transform_0(%arg0: i32, %arg1: i32) -> (i32, i32) {
    %c1_i32 = arith.constant 1 : i32
    %0 = arith.muli %arg0, %c1_i32 : i32
    %1 = arith.addi %0, %arg1 : i32
    %c0_i32 = arith.constant 0 : i32
    %c0_i32_0 = arith.constant 0 : i32
    return %1, %c0_i32 : i32, i32
  }
  func.func @transform_1(%arg0: i32, %arg1: i32) -> (i32, i32) {
    %c1_i32 = arith.constant 1 : i32
    %0 = arith.muli %arg0, %c1_i32 : i32
    %1 = arith.addi %0, %arg1 : i32
    %c0_i32 = arith.constant 0 : i32
    %c0_i32_0 = arith.constant 0 : i32
    return %1, %c0_i32 : i32, i32
  }
  func.func @transform_2(%arg0: i32, %arg1: i32) -> (i32, i32) {
    %c0_i32 = arith.constant 0 : i32
    %c0_i32_0 = arith.constant 0 : i32
    return %arg0, %c0_i32 : i32, i32
  }
}

</mosaic_0001>

<bundles_post_ra>
// kernel: tpu_custom_call.1
= control target key start
LH: loop header
LB: loop body
LE: loop exit
PB: predicated region body
PF: predicated region fallthrough
CT: control target
= control target key end

     0   :  { %vm65_vm0 = vcmask 261120   ;;  %v241_v4 = vmov 0   ;;  %s297_s0 = inlined_call_operand.vmem [shape: f32[16,32], index: 0, kind: input, shape index: {}]   ;;  %s298_s1 = inlined_call_operand.vmem [shape: s32[16,1], index: 1, kind: input, shape index: {}]   ;;  %s299_s2 = inlined_call_operand.hbm [shape: f32[8,128], index: 2, kind: output, shape index: {}]  }
   0x1   :  { %v63_v0 = vld [vmem:[%s297_s0] sm:$0xff]  ;;  %v64_v1 = vld [vmem:[%s297_s0 + $0x8] sm:$0xff]  ;;  %207 = vset.pattern.permute.xlu1 %v241_v4  ;;  %208 = vset.pattern.permute.xlu0 %v241_v4 }
   0x2   :  { %v96_v2 = vld [vmem:[%s298_s1] sm:$0xff]  ;;  %v66_v3 = vsel %vm65_vm0, %v63_v0, -inf }
   0x3   :  { %7 = vsyncpa [#allocation5], 0  ;;  %67 = vmax.xlane.f32.xlu0 %v66_v3  ;;  %101 = vperm.xlu1 %207, %v96_v2   ;;  %v69_v5 = vsel %vm65_vm0, %v64_v1, -inf  ;;  %v97_v6 = vld [vmem:[%s298_s1 + $0x8] sm:$0xff]  ;;  %v98_v13 = vlaneseq  ;;  %v90_v18 = vsel %vm65_vm0, %v63_v0, 0.0  ;;  %v93_v22 = vsel %vm65_vm0, %v64_v1, 0.0 }
   0x4   :  { %vm123_vm3 = vcmask 7168   ;;  %vm60_vm4 = vcmask 0   ;;  %v242_v51 = vmov 0.0   ;;  %s243_s17 = smov [#allocation4]  }
   0x5   :  { %v99_v17 = vand.u32 127, %v98_v13  ;;  %61 = vst.msk [vmem:[#allocation2] sm:$0x1] %vm60_vm4, %v242_v51  ;;  %62 = vst.msk [vmem:[#allocation3] sm:$0x1] %vm60_vm4, %v242_v51  ;;  %s180_s18 = sshll.u32 %s243_s17, 4  ;;  %s181_s18 = int_to_ptr.vmem [resolvable:$true] %s180_s18 }
   0x6   :  { %s217_s19 = scalar_lea.vmem %s181_s18, 128  ;;  %p222_p1 = scmp.lt.s32.totalorder %s181_s18, %s181_s18 }
   0x7   :  { %70 = vmax.xlane.f32.xlu0 %v69_v5  ;;  %104 = vperm.xlu1 %207, %v97_v6   ;;  %p218_p0 = scmp.ne.s32.totalorder %s181_s18, %s217_s19  ;;  %p223_p2 = scmp.lt.s32.totalorder %s217_s19, %s217_s19 }
   0x9   :  { %p224_p3 = por %p223_p2, %p222_p1 }
   0xb   :  { %p225_p4 = pnand %p224_p3, %p218_p0 }
   0xc   :  { %v122_v2 = vld [vmem:[#allocation2] sm:$0x1]  ;;  %v140_v5 = vld [vmem:[#allocation3] sm:$0x1] }
  0x82   :  { %v102_v15 = vpop.permute.xlu1 %101 }
  0x83   :  { %vm106_vm1 = vcmp.eq.s32.totalorder %v99_v17, %v102_v15 }
  0x84   :  { %v108_v23 = vsel %vm106_vm1, %v63_v0, 0.0 }
  0x85   :  { %v110_v24 = vsel %vm65_vm0, %v108_v23, 0.0 }
  0x86   :  { %v105_v21 = vpop.permute.xlu1 %104 }
  0x87   :  { %vm107_vm2 = vcmp.eq.s32.totalorder %v99_v17, %v105_v21 }
  0x88   :  { %v109_v25 = vsel %vm107_vm2, %v64_v1, 0.0 }
  0x89   :  { %v113_v26 = vsel %vm65_vm0, %v109_v25, 0.0 }
  0x90   :  { %v68_v7 = vpop.xlane.xlu0 %67 }
  0x91   :  { %v72_v8 = vsub.f32 %v63_v0, %v68_v7 }
  0x93   :  { %v74_v9 = vmul.f32 1.442695, %v72_v8  ;;  %v166_v8 = vshrl.u32 %v98_v13, 7 }
  0x94   :  { %v71_v10 = vpop.xlane.xlu0 %70 }
  0x95   :  { %209 = vpow2.f32 %v74_v9  ;;  %v73_v11 = vsub.f32 %v64_v1, %v71_v10 }
  0x97   :  { %v76_v12 = vmul.f32 1.442695, %v73_v11 }
  0x99   :  { %211 = vpow2.f32 %v76_v12 }
  0x9f   :  { %v210_v14 = vpop.eup %209 }
  0xa0   :  { %v78_v16 = vsel %vm65_vm0, %v210_v14, 0.0  ;;  %v167_v14 = vsub.s32 0, %v166_v8 }
  0xa1   :  { %79 = vadd.xlane.f32.xlu0 %v78_v16 }
  0xa3   :  { %v212_v19 = vpop.eup %211 }
  0xa4   :  { %v81_v20 = vsel %vm65_vm0, %v212_v19, 0.0 }
  0xa5   :  { %82 = vadd.xlane.f32.xlu1 %v81_v20  ;;  %91 = vadd.xlane.f32.xlu0 %v90_v18 }
  0xa9   :  { %94 = vadd.xlane.f32.xlu0 %v93_v22 }
  0xad   :  { %111 = vadd.xlane.f32.xlu0 %v110_v24 }
  0xb1   :  { %114 = vadd.xlane.f32.xlu0 %v113_v26 }
 0x12e   :  { %v80_v27 = vpop.xlane.xlu0 %79 }
 0x12f   :  { %213 = vlog2.f32 %v80_v27 }
 0x132   :  { %v83_v28 = vpop.xlane.xlu1 %82  ;;  %v92_v29 = vpop.xlane.xlu0 %91 }
 0x133   :  { %215 = vlog2.f32 %v83_v28 }
 0x136   :  { %v95_v30 = vpop.xlane.xlu0 %94 }
 0x139   :  { %v214_v31 = vpop.eup %213 }
 0x13a   :  { %v85_v32 = vmul.f32 0.6931472, %v214_v31  ;;  %v112_v33 = vpop.xlane.xlu0 %111 }
 0x13c   :  { %v88_v34 = vadd.f32 %v85_v32, %v68_v7 }
 0x13d   :  { %v216_v35 = vpop.eup %215 }
 0x13e   :  { %v87_v36 = vmul.f32 0.6931472, %v216_v35  ;;  %v116_v37 = vmul.f32 32.0, %v88_v34  ;;  %v115_v39 = vpop.xlane.xlu0 %114  ;;  %v120_v44 = vsub.f32 %v88_v34, %v112_v33 }
 0x140   :  { %v89_v38 = vadd.f32 %v87_v36, %v71_v10  ;;  %v118_v40 = vsub.f32 %v116_v37, %v92_v29  ;;  %v141_v49 = vsel %vm123_vm3, %v120_v44, 0.0 }
 0x142   :  { %v117_v41 = vmul.f32 32.0, %v89_v38  ;;  %v121_v43 = vsub.f32 %v89_v38, %v115_v39  ;;  %v124_v45 = vsel %vm123_vm3, %v118_v40, 0.0 }
 0x144   :  { %v119_v42 = vsub.f32 %v117_v41, %v95_v30  ;;  %v142_v48 = vsel %vm123_vm3, %v121_v43, 0.0 }
 0x145   :  { %v143_v50 = vadd.f32 %v142_v48, %v141_v49 }
 0x146   :  { %v125_v46 = vsel %vm123_vm3, %v119_v42, 0.0 }
 0x147   :  { %v126_v47 = vadd.f32 %v125_v46, %v124_v45 }
 0x149   :  { %127 = vadd.xlane.f32.xlu0 %v126_v47 }
 0x14d   :  { %144 = vadd.xlane.f32.xlu0 %v143_v50 }
 0x1d6   :  { %v128_v52 = vpop.xlane.xlu0 %127 }
 0x1d7   :  { %v129_v53 = vrot.slane %v128_v52, 4 }
 0x1d9   :  { %v130_v54 = vadd.f32 %v129_v53, %v128_v52 }
 0x1da   :  { %v145_v55 = vpop.xlane.xlu0 %144 }
 0x1db   :  { %v131_v56 = vrot.slane %v130_v54, 2  ;;  %v146_v57 = vrot.slane %v145_v55, 4 }
 0x1dd   :  { %v147_v58 = vadd.f32 %v146_v57, %v145_v55  ;;  %v132_v59 = vadd.f32 %v131_v56, %v130_v54 }
 0x1df   :  { %v148_v60 = vrot.slane %v147_v58, 2  ;;  %v133_v61 = vrot.slane %v132_v59, 1 }
 0x1e1   :  { %v134_v62 = vadd.f32 %v133_v61, %v132_v59  ;;  %v149_v63 = vadd.f32 %v148_v60, %v147_v58 }
 0x1e3   :  { %200 = vpush %v134_v62  ;;  %v150_v0 = vrot.slane %v149_v63, 1 }
 0x1e5   :  { %v151_v1 = vadd.f32 %v150_v0, %v149_v63 }
 0x1e7   :  { %202 = vpush %v151_v1 }
 0x214   :  { %s201_s0 = spop %200 }
 0x215   :  { %v136_v3 = vstv %s201_s0 }
 0x216   :  { %v137_v4 = vadd.f32 %v136_v3, %v122_v2 }
 0x218   :  { %139 = vst.msk [vmem:[#allocation2] sm:$0x1] %vm60_vm4, %v137_v4  ;;  %s203_s1 = spop %202 }
 0x219   :  { %v153_v6 = vstv %s203_s1 }
 0x21a   :  { %v154_v7 = vadd.f32 %v153_v6, %v140_v5 }
 0x21c   :  { %155 = vst.msk [vmem:[#allocation3] sm:$0x1] %vm60_vm4, %v154_v7 }
 0x21f   :  { %v159_v9 = vld [vmem:[#allocation2] sm:$0x1] }
 0x220   :  { %v160_v11 = vmul.f32 0.0001953125, %v159_v9 }
 0x223   :  { %v161_v10 = vld [vmem:[#allocation3] sm:$0x1] }
 0x224   :  { %v162_v12 = vmul.f32 0.05625, %v161_v10 }
 0x226   :  { %v163_v15 = vadd.f32 %v162_v12, %v160_v11 }
 0x228   :  { %v168_v16 = vrot.slane %v163_v15, %v167_v14 }
 0x22a   :  { %170 = vperm.xlu0 %208, %v168_v16  }
 0x2a9   :  { %v171_v17 = vpop.permute.xlu0 %170 }
 0x2aa   :  { %173 = vst [vmem:[#allocation4] sm:$0xff] %v171_v17 }
 0x2ab   :  { %228 = shalt.err (!%p225_p4)
}
 0x2ac   :  { %s229_s22 = scalar_lea.hbm %s299_s2, 128 }
 0x2ad   :  { %p230_p5 = scmp.ne.s32.totalorder %s299_s2, %s229_s22  ;;  %p233_p6 = scmp.lt.u32.totalorder %s229_s22, %s299_s2 }
 0x2af   :  { %p235_p7 = pnand %p233_p6, %p230_p5 }
 0x2b1   :  { %238 = shalt.err (!%p235_p7)
}
 0x2b2   :  { %183 = dma.vmem_to_hbm [thread:$0]  %s181_s18, 128, %s299_s2, [#allocation5]  }
 0x2b3   :  { %239 = dma.done.wait [#allocation5], 128  }
 0x2b4   :  { %240 = vsyncadd [#allocation5], 4294967168 }
 0x2b5   :  { %187 = vsyncpa [#allocation5], 1 }

</bundles_post_ra>
